<compile_context>
chip_gen: v5e
topology: v5e:2x2
jax: 0.10.0
libtpu: 0.0.40
codegen_flags: <defaults>
</compile_context>

<pallas_src>
import functools

import jax
import jax.numpy as jnp
from jax.experimental import pallas as pl
from jax.experimental.pallas import tpu as pltpu

LANE = 128  # lane width


def _head_kernel(x_ref, w1_ref, b1_ref, w2_ref, b2_ref, o_ref, *, act_dtype):
    # x arrives in its original dtype (f32); cast to bf16 in-kernel so the
    # wrapper never makes an extra pad/cast pass over it in HBM.
    x = x_ref[...].astype(jnp.bfloat16)
    # dense: bf16 MXU operands, f32 accumulation
    h = jnp.dot(x, w1_ref[...], preferred_element_type=jnp.float32)
    # bias add (f32 accumulator side) + tanh; bf16 on v6e/v7x (bf16 EUP),
    # f32 on v5e (no bf16 EUP).
    h = jnp.tanh((h + b1_ref[...]).astype(act_dtype))
    # TODO(synk): dropout is identity in eval mode; training-mode dropout would
    # need pltpu.prng_seed + pltpu.stateful_bernoulli.
    # out_proj: bf16 MXU operands, f32 accumulation
    y = jnp.dot(h.astype(jnp.bfloat16), w2_ref[...],
                preferred_element_type=jnp.float32)
    o_ref[...] = (y + b2_ref[...]).astype(o_ref.dtype)


def _chip_tuning():
    """Returns (activation/tanh dtype, TensorCores per chip, vmem_limit_bytes)."""
    try:
        kind = jax.devices()[0].device_kind.lower()
    except Exception:
        kind = ""
    # bf16 VPU/EUP exists on v6e/v7x; keep f32 activations elsewhere (v5e etc.).
    act_dtype = jnp.bfloat16 if ("v6" in kind or "v7" in kind) else jnp.float32
    if "v7" in kind:
        return act_dtype, 2, 32 * 1024 * 1024   # 2 TCs/chip, 64 MiB physical VMEM
    return act_dtype, 1, 64 * 1024 * 1024       # 1 TC/chip, 128 MiB physical VMEM


def prepare_head_params(w_dense, b_dense, w_out, b_out):
    """One-time parameter preparation (do NOT redo per call).

    Weights are (in_features, out_features) -- transposed vs. nn.Linear storage.
    Returns bf16 weights, f32 (1, N) biases with classes padded to a lane
    multiple (128) for unmasked lane-dense stores, plus the true class count.
    """
    H = w_dense.shape[0]
    C = w_out.shape[1]
    C_pad = pl.cdiv(C, LANE) * LANE
    w1 = w_dense.astype(jnp.bfloat16)
    w2 = jnp.pad(w_out, ((0, 0), (0, C_pad - C))).astype(jnp.bfloat16)
    b1 = b_dense.reshape(1, H).astype(jnp.float32)
    b2 = jnp.pad(b_out, (0, C_pad - C)).reshape(1, C_pad).astype(jnp.float32)
    return (w1, b1, w2, b2, C)


def _choose_batch_tiling(B, max_block_b, cores):
    # Balance the grid across TensorCores (v7x: 2) and keep the batch tile a
    # sublane multiple (8 for the f32 x blocks).
    n_b = pl.cdiv(B, max_block_b)
    if cores > 1 and n_b > 1:
        n_b = pl.cdiv(n_b, cores) * cores
    block_b = ((pl.cdiv(B, n_b) + 7) // 8) * 8
    n_b = pl.cdiv(B, block_b)
    return block_b, n_b


def hubert_classification_head_prepared(x, prepared, *, max_block_b=512,
                                        gridless_max_b=None, out_dtype=None):
    """y = tanh(x @ w_dense + b_dense) @ w_out + b_out, prepared params."""
    w1, b1, w2, b2, C = prepared
    B, H = x.shape
    C_pad = w2.shape[1]
    out_dtype = x.dtype if out_dtype is None else out_dtype

    act_dtype, cores, vmem_limit = _chip_tuning()
    kernel = functools.partial(_head_kernel, act_dtype=act_dtype)

    if gridless_max_b is None:
        # Single-TC chips: whole problem fits VMEM-resident for B in the
        # thousands; the grid only adds pipeline/step overhead there.
        gridless_max_b = 2048 if cores == 1 else max_block_b

    if B <= gridless_max_b:
        # Gridless: whole arrays are single VMEM-resident blocks; no pipeline
        # prologue/epilogue or double-buffering.
        vmem = pl.BlockSpec(memory_space=pltpu.MemorySpace.VMEM)
        y = pl.pallas_call(
            kernel,
            out_shape=jax.ShapeDtypeStruct((B, C_pad), out_dtype),
            in_specs=[vmem] * 5,
            out_specs=vmem,
            compiler_params=pltpu.CompilerParams(vmem_limit_bytes=vmem_limit),
        )(x, w1, b1, w2, b2)
    else:
        block_b, n_b = _choose_batch_tiling(B, max_block_b, cores)
        # B need not be a multiple of block_b: the boundary block reads rows
        # past the end (row-independent compute, results discarded) and only
        # in-bounds output rows are written.
        y = pl.pallas_call(
            kernel,
            out_shape=jax.ShapeDtypeStruct((B, C_pad), out_dtype),
            grid=(n_b,),
            in_specs=[
                pl.BlockSpec((block_b, H), lambda i: (i, 0)),   # x streams (f32)
                # weights/biases stay VMEM-resident across grid steps; for very
                # large H on v7x, pipeline_mode=pl.Buffered(1) would drop the
                # unused second buffer.
                pl.BlockSpec((H, H), lambda i: (0, 0)),
                pl.BlockSpec((1, H), lambda i: (0, 0)),
                pl.BlockSpec((H, C_pad), lambda i: (0, 0)),
                pl.BlockSpec((1, C_pad), lambda i: (0, 0)),
            ],
            out_specs=pl.BlockSpec((block_b, C_pad), lambda i: (i, 0)),
            compiler_params=pltpu.CompilerParams(
                dimension_semantics=("parallel",),
                vmem_limit_bytes=vmem_limit,
            ),
        )(x, w1, b1, w2, b2)

    return y[:, :C]


def hubert_classification_head(x, w_dense, b_dense, w_out, b_out, **kwargs):
    """One-shot convenience wrapper. For repeated inference, call
    prepare_head_params() once and reuse hubert_classification_head_prepared."""
    prepared = prepare_head_params(w_dense, b_dense, w_out, b_out)
    return hubert_classification_head_prepared(x, prepared, **kwargs)


if __name__ == "__main__":
    key = jax.random.PRNGKey(0)
    act_dtype, _, _ = _chip_tuning()

    def make_params(k, H, C):
        kw1, kb1, kw2, kb2 = jax.random.split(k, 4)
        w_dense = jax.random.normal(kw1, (H, H), dtype=jnp.float32) * 0.05
        b_dense = jax.random.normal(kb1, (H,), dtype=jnp.float32) * 0.01
        w_out = jax.random.normal(kw2, (H, C), dtype=jnp.float32) * 0.05
        b_out = jax.random.normal(kb2, (C,), dtype=jnp.float32) * 0.01
        return w_dense, b_dense, w_out, b_out

    def ref_matched(x, w1, b1, w2, b2):
        # Matches kernel numerics: bf16 MXU operands, f32 accumulation,
        # tanh in the chip-dependent activation dtype.
        h = jnp.dot(x.astype(jnp.bfloat16), w1.astype(jnp.bfloat16),
                    preferred_element_type=jnp.float32) + b1
        h = jnp.tanh(h.astype(act_dtype))
        return jnp.dot(h.astype(jnp.bfloat16), w2.astype(jnp.bfloat16),
                       preferred_element_type=jnp.float32) + b2

    def ref_f32(x, w1, b1, w2, b2):
        return jnp.tanh(x @ w1 + b1) @ w2 + b2

    # ---- small shapes consistent with the module: batch=2, hidden=32, classes=8 ----
    B, H, C = 2, 32, 8
    k0, k1 = jax.random.split(key)
    x = jax.random.normal(k0, (B, H), dtype=jnp.float32)
    params = make_params(k1, H, C)
    prepared = prepare_head_params(*params)     # one-time prep (hoisted out of the call)

    y = jax.block_until_ready(hubert_classification_head_prepared(x, prepared))
    assert y.shape == (B, C) and y.dtype == x.dtype
    assert jnp.allclose(y, ref_matched(x, *params), atol=5e-3, rtol=5e-3)
    assert jnp.allclose(y, ref_f32(x, *params), atol=3e-2, rtol=3e-2)

    # ---- larger batch: force the batch-tiled ("parallel") grid path ----
    B2, H2, C2 = 600, 64, 8
    k2, k3 = jax.random.split(k1)
    x2 = jax.random.normal(k2, (B2, H2), dtype=jnp.float32)
    params2 = make_params(k3, H2, C2)
    prepared2 = prepare_head_params(*params2)

    y2 = jax.block_until_ready(
        hubert_classification_head_prepared(x2, prepared2,
                                            max_block_b=512, gridless_max_b=128))
    assert y2.shape == (B2, C2)
    assert jnp.allclose(y2, ref_matched(x2, *params2), atol=5e-3, rtol=5e-3)
    assert jnp.allclose(y2, ref_f32(x2, *params2), atol=3e-2, rtol=3e-2)

    # Default-routing path (gridless on single-TC chips) also runs clean.
    y3 = jax.block_until_ready(hubert_classification_head(x2, *params2))
    assert jnp.allclose(y3, ref_matched(x2, *params2), atol=5e-3, rtol=5e-3)

    print("KERNEL_OK")
</pallas_src>

<mosaic_0001>
module attributes {stable_mosaic.version = 11 : i64} {
  func.func @_head_kernel(%arg0: memref<2x32xf32, #tpu.memory_space<vmem>>, %arg1: memref<32x32xbf16, #tpu.memory_space<vmem>>, %arg2: memref<1x32xf32, #tpu.memory_space<vmem>>, %arg3: memref<32x128xbf16, #tpu.memory_space<vmem>>, %arg4: memref<1x128xf32, #tpu.memory_space<vmem>>, %arg5: memref<2x128xf32, #tpu.memory_space<vmem>>) attributes {dimension_semantics = [], scalar_prefetch = 0 : i64, scratch_operands = 0 : i64, tpu.core_type = #tpu.core_type<tc>} {
    %c0 = arith.constant 0 : index
    %c0_0 = arith.constant 0 : index
    %0 = vector.load %arg0[%c0, %c0_0] : memref<2x32xf32, #tpu.memory_space<vmem>>, vector<2x32xf32>
    %1 = arith.truncf %0 : vector<2x32xf32> to vector<2x32xbf16>
    %c0_1 = arith.constant 0 : index
    %c0_2 = arith.constant 0 : index
    %2 = vector.load %arg1[%c0_1, %c0_2] : memref<32x32xbf16, #tpu.memory_space<vmem>>, vector<32x32xbf16>
    %cst = arith.constant dense<0.000000e+00> : vector<2x32xf32>
    %3 = tpu.matmul %1, %2, %cst {dimension_numbers = #tpu.dot_dimension_numbers<[1], [0], [0], [1], [0, 0, 1, 1], [], []>} : vector<2x32xbf16>, vector<32x32xbf16>, vector<2x32xf32> -> vector<2x32xf32>
    %c0_3 = arith.constant 0 : index
    %c0_4 = arith.constant 0 : index
    %4 = vector.load %arg2[%c0_3, %c0_4] : memref<1x32xf32, #tpu.memory_space<vmem>>, vector<1x32xf32>
    %5 = vector.broadcast %4 : vector<1x32xf32> to vector<2x32xf32>
    %6 = arith.addf %3, %5 : vector<2x32xf32>
    %7 = math.tanh %6 : vector<2x32xf32>
    %8 = arith.truncf %7 : vector<2x32xf32> to vector<2x32xbf16>
    %c0_5 = arith.constant 0 : index
    %c0_6 = arith.constant 0 : index
    %9 = vector.load %arg3[%c0_5, %c0_6] : memref<32x128xbf16, #tpu.memory_space<vmem>>, vector<32x128xbf16>
    %cst_7 = arith.constant dense<0.000000e+00> : vector<2x128xf32>
    %10 = tpu.matmul %8, %9, %cst_7 {dimension_numbers = #tpu.dot_dimension_numbers<[1], [0], [0], [1], [0, 0, 1, 1], [], []>} : vector<2x32xbf16>, vector<32x128xbf16>, vector<2x128xf32> -> vector<2x128xf32>
    %c0_8 = arith.constant 0 : index
    %c0_9 = arith.constant 0 : index
    %11 = vector.load %arg4[%c0_8, %c0_9] : memref<1x128xf32, #tpu.memory_space<vmem>>, vector<1x128xf32>
    %12 = vector.broadcast %11 : vector<1x128xf32> to vector<2x128xf32>
    %13 = arith.addf %10, %12 : vector<2x128xf32>
    %c0_10 = arith.constant 0 : index
    %c0_11 = arith.constant 0 : index
    %14 = vector.load %arg5[%c0_10, %c0_11] : memref<2x128xf32, #tpu.memory_space<vmem>>, vector<2x128xf32>
    tpu.vector_store %arg5[%c0_10, %c0_11], %13 {strides = array<i32>} : memref<2x128xf32, #tpu.memory_space<vmem>>, vector<2x128xf32>,
    return
  }
}

</mosaic_0001>

<bundles_post_ra>
// kernel: tpu_custom_call.1
= control target key start
LH: loop header
LB: loop body
LE: loop exit
PB: predicated region body
PF: predicated region fallthrough
CT: control target
= control target key end

     0   :  { %10 = vsyncpa [#allocation3], 0  ;;  %s351_s0 = inlined_call_operand.hbm [shape: f32[2,32], index: 0, kind: input, shape index: {}]   ;;  %s352_s1 = inlined_call_operand.hbm [shape: bf16[32,32], index: 1, kind: input, shape index: {}]   ;;  %s353_s2 = inlined_call_operand.vmem [shape: f32[1,32], index: 2, kind: input, shape index: {}]   ;;  %s354_s3 = inlined_call_operand.hbm [shape: bf16[32,128], index: 3, kind: input, shape index: {}]   ;;  %s355_s4 = inlined_call_operand.vmem [shape: f32[1,128], index: 4, kind: input, shape index: {}]   ;;  %s356_s5 = inlined_call_operand.hbm [shape: f32[2,128], index: 5, kind: output, shape index: {}]  }
   0x1   :  { %11 = vsyncpa [#allocation6], 0  ;;  %s28_s20 = sshll.u32 %s352_s1, 4  ;;  %s29_s20 = int_to_ptr.hbm [resolvable:$true] %s28_s20 }
   0x2   :  { %12 = vsyncpa [#allocation4], 0  ;;  %s297_s21 = smov [#allocation5]   ;;  %s18_s25 = sshll.u32 %s351_s0, 4  ;;  %s19_s25 = int_to_ptr.hbm [resolvable:$true] %s18_s25 }
   0x3   :  { %s30_s22 = sshll.u32 %s297_s21, 4  ;;  %s298_s26 = smov 64   ;;  %s31_s22 = int_to_ptr.vmem [resolvable:$true] %s30_s22 }
   0x4   :  { %s299_s27 = smov 4   ;;  %s300_s28 = smov [#allocation2]  }
   0x5   :  { %36 = dma.hbm_to_vmem [thread:$0]  %s29_s20, 256, %s31_s22, [#allocation6], %s298_s26, %s298_s26, %s299_s27  }
   0x6   :  { %s20_s29 = sshll.u32 %s300_s28, 4  ;;  %s43_s7 = sshll.u32 %s354_s3, 4  ;;  %s21_s29 = int_to_ptr.vmem [resolvable:$true] %s20_s29  ;;  %s44_s7 = int_to_ptr.hbm [resolvable:$true] %s43_s7 }
   0x7   :  { %23 = dma.hbm_to_vmem [thread:$0]  %s19_s25, 32, %s21_s29, [#allocation3]  }
   0x8   :  { %s301_s1 = smov [#allocation7]  }
   0x9   :  { %s45_s8 = sshll.u32 %s301_s1, 4  ;;  %s46_s8 = int_to_ptr.vmem [resolvable:$true] %s45_s8 }
   0xa   :  { %51 = dma.hbm_to_vmem [thread:$0]  %s44_s7, 256, %s46_s8, [#allocation6], %s298_s26, %s298_s26, %s299_s27  }
   0xb   :  { %291 = dma.done.wait [#allocation3], 32  }
   0xc   :  { %292 = vsyncadd [#allocation3], 4294967264 }
   0xd   :  { %293 = dma.done.wait [#allocation6], 512  }
   0xe   :  { %294 = vsyncadd [#allocation6], 4294966784  ;;  %v182_v0 = vld [vmem:[#allocation5 + $0x8] sm:$0xff]  ;;  %v181_v1 = vld [vmem:[#allocation5] sm:$0xff]  ;;  %vm89_vm0 = vcmask 261120   ;;  %s302_s11 = smov [#allocation8]  }
   0xf   :  { %99 = vmatpush.bf16.msra.mxu0 %v182_v0  ;;  %v67_v2 = vld [vmem:[#allocation2] sm:$0x3]  ;;  %v183_v5 = vld [vmem:[#allocation7] sm:$0xff]  ;;  %s150_s12 = sshll.u32 %s302_s11, 4  ;;  %s152_s15 = sshll.u32 %s356_s5, 4  ;;  %s151_s12 = int_to_ptr.vmem [resolvable:$true] %s150_s12  ;;  %s153_s15 = int_to_ptr.hbm [resolvable:$true] %s152_s15 }
  0x10   :  { %v68_v3 = vpack.c.bf16 %v67_v2, %v67_v2  ;;  %v184_v4 = vld [vmem:[#allocation7 + $0x8] sm:$0xff] }
  0x11   :  { %137 = vmatpush.bf16.msra.mxu1 %v184_v4  ;;  %v191_v6 = vld [vmem:[%s353_s2] ss:$0 sm:$0xff] }
  0x12   :  { %v192_v12 = vld [vmem:[%s355_s4] ss:$0 sm:$0xff] }
  0x13   :  { %100 = vmatpush.bf16.msra.mxu0 %v181_v1 }
  0x15   :  { %138 = vmatpush.bf16.msra.mxu1 %v183_v5 }
  0x16   :  { %171 = vmatmul.msk.bf16.vlgmr.msra.gmra.mxu0 %vm89_vm0, %v68_v3 }
  0x93   :  { %v102_v7 = vpop.f32.mrf.mxu0 }
  0x94   :  { %v103_v8 = vadd.f32 %v191_v6, %v102_v7 }
  0x96   :  { %193 = vtanh.f32 %v103_v8 }
  0x9b   :  { %v104_v9 = vpop.f32.mrf.mxu0 }
  0x9c   :  { %v194_v10 = vpop.eup %193 }
  0x9d   :  { %v107_v11 = vpack.c.bf16 %v194_v10, %v194_v10 }
  0x9f   :  { %180 = vmatmul.msk.bf16.vlgmr.msra.gmra.mxu1 %vm89_vm0, %v107_v11 }
 0x11c   :  { %v140_v13 = vpop.f32.mrf.mxu1 }
 0x11d   :  { %v141_v14 = vadd.f32 %v192_v12, %v140_v13 }
 0x11f   :  { %144 = vst [vmem:[#allocation8] sm:$0x3] %v141_v14 }
 0x120   :  { %155 = dma.vmem_to_hbm [thread:$0]  %s151_s12, 32, %s153_s15, [#allocation4]  }
 0x124   :  { %v142_v15 = vpop.f32.mrf.mxu1 }
 0x125   :  { %295 = dma.done.wait [#allocation4], 32  }
 0x126   :  { %296 = vsyncadd [#allocation4], 4294967264 }
 0x127   :  { %160 = vsyncpa [#allocation3], 1 }
 0x128   :  { %161 = vsyncpa [#allocation6], 1 }
 0x129   :  { %162 = vsyncpa [#allocation4], 1 }

</bundles_post_ra>
